<compile_context>
chip_gen: v7x
topology: tpu7x:2x2x1
jax: 0.10.0
libtpu: 0.0.40
codegen_flags: <defaults>
</compile_context>

<pallas_src>
import math

import jax
import jax.numpy as jnp
from jax.experimental import pallas as pl
from jax.experimental.pallas import tpu as pltpu

_LANE = 128


def _round_up(x, m):
    return (x + m - 1) // m * m


def _pad2d(a, rows, cols):
    return jnp.pad(a, ((0, rows - a.shape[0]), (0, cols - a.shape[1])))


def _gelu_tanh(x):
    # tanh approximation of GELU (same formula in kernel and reference).
    c = 0.7978845608028654  # sqrt(2/pi)
    return 0.5 * x * (1.0 + jnp.tanh(c * (x + 0.044715 * x * x * x)))


# ----------------------------------------------------------------------------
# Hardware-aware tiling helpers
# ----------------------------------------------------------------------------
def _tpu_vmem_capacity():
    try:
        cap = int(getattr(pltpu.get_tpu_info(), "vmem_capacity_bytes"))
        if cap > 0:
            return cap
    except Exception:
        pass
    return 64 << 20  # conservative fallback (v7x has the smallest VMEM)


_VMEM_CAP = _tpu_vmem_capacity()
# v5e/v6e (128 MiB VMEM): allow 512-row tiles; v7x (64 MiB): cap at 256.
_ROW_TILE_CAP = 512 if _VMEM_CAP >= (100 << 20) else 256
_VMEM_BUDGET = int(_VMEM_CAP * 0.55)  # headroom for scratch / semaphores / spills


def _row_tiling(m, act_bytes_per_row, resident_bytes, budget_bytes):
    """Pick (row tile, padded rows). Tile is a multiple of 16 (bf16 sublanes)."""
    mp = _round_up(max(m, 1), 16)
    tm = _ROW_TILE_CAP
    # Shrink until resident weights + double-buffered activation/out tiles fit.
    while tm > 16 and resident_bytes + 2 * tm * act_bytes_per_row > budget_bytes:
        tm //= 2
    # Keep >= 2 grid steps when there is enough work: v7x has 2 TensorCores per
    # chip and the "parallel" grid axis can only shard >1 step.
    while tm > 16 and mp <= tm:
        tm //= 2
    tm = max(16, tm)
    return tm, _round_up(mp, tm)


def _vmem_limit(need_bytes):
    return int(min(max(2 * need_bytes, 32 << 20), int(_VMEM_CAP * 0.8)))


def _resident_spec(shape):
    """BlockSpec for weights/biases: constant index_map (fetched once, resident
    in VMEM across the whole grid). Single-buffered so they do not pay the
    default 2-deep pipeline buffer — this halves the weight VMEM footprint,
    which matters most on v7x's 64 MiB."""
    index_map = lambda i: (0,) * len(shape)
    if hasattr(pl, "Buffered"):
        try:
            return pl.BlockSpec(shape, index_map,
                                memory_space=pltpu.MemorySpace.VMEM,
                                pipeline_mode=pl.Buffered(1))
        except TypeError:  # pipeline_mode kwarg unavailable -> default buffering
            pass
    return pl.BlockSpec(shape, index_map, memory_space=pltpu.MemorySpace.VMEM)


# ----------------------------------------------------------------------------
# Head 1: triggerAware_linear  (get_triggerAwared_entity, fused)
# ----------------------------------------------------------------------------
def _trigger_aware_kernel(e_ref, t_ref, we_ref, wt_ref, wet_ref, b_ref, o_ref):
    e = e_ref[...]                                   # (tm, embp) f32
    t = t_ref[...]                                   # (tm, embp) f32
    # Fused torch-side concat:  cat(e, t, e*t) @ W  ==  e@We + t@Wt + (e*t)@Wet.
    # bf16 MXU operands, f32 accumulation; bias / mask math stays f32.
    h = jnp.dot(e.astype(jnp.bfloat16), we_ref[...],
                preferred_element_type=jnp.float32)
    h = h + jnp.dot(t.astype(jnp.bfloat16), wt_ref[...],
                    preferred_element_type=jnp.float32)
    h = h + jnp.dot((e * t).astype(jnp.bfloat16), wet_ref[...],
                    preferred_element_type=jnp.float32)
    h = h + b_ref[...]
    # non-empty-entity mask computed on-chip (feature padding lanes are zero, so
    # the abs-sum over the padded dim equals the torch mask on the real dim).
    non_empty = jnp.sum(jnp.abs(e), axis=-1, keepdims=True) > 0.0
    o_ref[...] = jnp.where(non_empty, h, 0.0).astype(o_ref.dtype)


def prepare_trigger_aware_params(w, b):
    """One-time prep. w: (3*emb, emb) (transposed torch Linear weight), b: (emb,)."""
    k3, emb = w.shape
    assert k3 == 3 * emb
    embp = _round_up(emb, _LANE)
    return dict(
        emb=emb, embp=embp,
        we=_pad2d(w[:emb].astype(jnp.bfloat16), embp, embp),
        wt=_pad2d(w[emb:2 * emb].astype(jnp.bfloat16), embp, embp),
        wet=_pad2d(w[2 * emb:].astype(jnp.bfloat16), embp, embp),
        b=_pad2d(b.reshape(1, -1).astype(jnp.float32), 1, embp),
    )


def trigger_aware_entity(prep, entity_embeddings, trigger_embeddings):
    """entity_embeddings: (B, n_e, emb); trigger_embeddings: (B, emb) -> (B, n_e, emb)."""
    B, n_e, emb = entity_embeddings.shape
    assert emb == prep["emb"]
    embp = prep["embp"]
    M = B * n_e

    e2 = entity_embeddings.reshape(M, emb).astype(jnp.float32)
    # Broadcast trigger per entity (torch `.repeat`) — but never build the
    # 3*emb concat or the mask in HBM; both are fused into the kernel.
    t2 = jnp.broadcast_to(trigger_embeddings[:, None, :],
                          (B, n_e, emb)).reshape(M, emb).astype(jnp.float32)

    act_bytes = 3 * embp * 4                  # e tile + t tile + out tile (f32)
    resident = 3 * embp * embp * 2 + embp * 4  # bf16 weights (x1 buffer) + f32 bias
    tm, mp = _row_tiling(M, act_bytes, resident, _VMEM_BUDGET)

    ep = _pad2d(e2, mp, embp)
    tp = _pad2d(t2, mp, embp)

    cost = pl.CostEstimate(
        flops=3 * 2 * mp * embp * embp,
        transcendentals=0,
        bytes_accessed=(ep.size + tp.size + mp * embp) * 4 + resident)

    out = pl.pallas_call(
        _trigger_aware_kernel,
        out_shape=jax.ShapeDtypeStruct((mp, embp), jnp.float32),
        grid=(mp // tm,),
        in_specs=[
            pl.BlockSpec((tm, embp), lambda i: (i, 0),
                         memory_space=pltpu.MemorySpace.VMEM),
            pl.BlockSpec((tm, embp), lambda i: (i, 0),
                         memory_space=pltpu.MemorySpace.VMEM),
            _resident_spec((embp, embp)),
            _resident_spec((embp, embp)),
            _resident_spec((embp, embp)),
            _resident_spec((1, embp)),
        ],
        out_specs=pl.BlockSpec((tm, embp), lambda i: (i, 0),
                               memory_space=pltpu.MemorySpace.VMEM),
        compiler_params=pltpu.CompilerParams(
            dimension_semantics=("parallel",),
            vmem_limit_bytes=_vmem_limit(resident + 2 * tm * act_bytes)),
        cost_estimate=cost,
    )(ep, tp, prep["we"], prep["wt"], prep["wet"], prep["b"])

    return out[:M, :emb].reshape(B, n_e, emb)


# ----------------------------------------------------------------------------
# Head 2: self.linear  (Linear(6*emb, n_hid) -> GELU -> Linear(n_hid, 1))
# ----------------------------------------------------------------------------
def _score_head_kernel(x_ref, w0_ref, b0_ref, w1_ref, b1_ref, o_ref):
    x = x_ref[...].astype(jnp.bfloat16)                      # (tm, k0p)
    h = jnp.dot(x, w0_ref[...], preferred_element_type=jnp.float32) + b0_ref[...]
    h = _gelu_tanh(h)                                        # f32 (v5e: no bf16 VPU/EUP)
    # Linear(n_hid, 1) as elementwise multiply + lane reduction (VPU + XLU)
    # instead of a 128x lane-padded MXU matmul; shrinks writeback to 1 column.
    s = jnp.sum(h * w1_ref[...], axis=-1, keepdims=True) + b1_ref[0, 0]
    o_ref[...] = s.astype(o_ref.dtype)


def prepare_score_head_params(w0, b0, w1, b1):
    """One-time prep. w0: (6*emb, n_hid), b0: (n_hid,), w1: (n_hid, 1), b1: scalar."""
    k0, n_hid = w0.shape
    k0p = _round_up(k0, _LANE)
    n_hid_p = _round_up(n_hid, _LANE)
    return dict(
        k0=k0, k0p=k0p, n_hid=n_hid, n_hid_p=n_hid_p,
        w0=_pad2d(w0.astype(jnp.bfloat16), k0p, n_hid_p),
        b0=_pad2d(b0.reshape(1, -1).astype(jnp.float32), 1, n_hid_p),
        w1=_pad2d(jnp.reshape(w1, (1, n_hid)).astype(jnp.float32), 1, n_hid_p),
        b1=jnp.reshape(jnp.asarray(b1, jnp.float32), (1, 1)),
    )


def arg_score_head(prep, x):
    """x: (..., 6*emb) -> (...,) scores (== self.linear(latent).squeeze(3))."""
    k0, k0p, n_hid_p = prep["k0"], prep["k0p"], prep["n_hid_p"]
    lead = x.shape[:-1]
    M = int(math.prod(lead))
    x2 = x.reshape(M, k0).astype(jnp.float32)

    act_bytes = (k0p + 1) * 4                              # x tile + (tm,1) out tile
    resident = k0p * n_hid_p * 2 + 2 * n_hid_p * 4 + 4     # bf16 W0 + f32 b0,w1,b1
    tm, mp = _row_tiling(M, act_bytes, resident, _VMEM_BUDGET)

    xp = _pad2d(x2, mp, k0p)

    cost = pl.CostEstimate(
        flops=2 * mp * k0p * n_hid_p + 4 * mp * n_hid_p,
        transcendentals=mp * n_hid_p,
        bytes_accessed=xp.size * 4 + mp * 4 + resident)

    out = pl.pallas_call(
        _score_head_kernel,
        out_shape=jax.ShapeDtypeStruct((mp, 1), jnp.float32),
        grid=(mp // tm,),
        in_specs=[
            pl.BlockSpec((tm, k0p), lambda i: (i, 0),
                         memory_space=pltpu.MemorySpace.VMEM),
            _resident_spec((k0p, n_hid_p)),
            _resident_spec((1, n_hid_p)),
            _resident_spec((1, n_hid_p)),
            pl.BlockSpec(memory_space=pltpu.MemorySpace.SMEM),   # b1 scalar
        ],
        out_specs=pl.BlockSpec((tm, 1), lambda i: (i, 0),
                               memory_space=pltpu.MemorySpace.VMEM),
        compiler_params=pltpu.CompilerParams(
            dimension_semantics=("parallel",),
            vmem_limit_bytes=_vmem_limit(resident + 2 * tm * act_bytes)),
        cost_estimate=cost,
    )(xp, prep["w0"], prep["b0"], prep["w1"], prep["b1"])

    return out[:M, 0].reshape(lead)


# ----------------------------------------------------------------------------
# Demo / correctness check
# ----------------------------------------------------------------------------
if __name__ == "__main__":
    key = jax.random.PRNGKey(0)
    # Small stand-ins for the module dims: embedding_dim, n_hid, batch,
    # number of entity candidates, number of argument-role queries.
    emb, n_hid = 32, 64
    B, n_e, n_r = 2, 4, 4
    keys = jax.random.split(key, 9)

    # ---------------- triggerAware_linear head ----------------
    entity = jax.random.normal(keys[0], (B, n_e, emb), jnp.float32)
    entity = entity.at[0, 2].set(0.0)                 # one padded/empty entity slot
    trigger = jax.random.normal(keys[1], (B, emb), jnp.float32)

    bnd = 1.0 / (3 * emb) ** 0.5
    w_ta = jax.random.uniform(keys[2], (3 * emb, emb), jnp.float32, -bnd, bnd)
    b_ta = jax.random.uniform(keys[3], (emb,), jnp.float32, -bnd, bnd)
    ta_prep = prepare_trigger_aware_params(w_ta, b_ta)

    ta_out = trigger_aware_entity(ta_prep, entity, trigger)

    # pure-JAX f32 reference (same math as the torch module, eval mode)
    trig = jnp.broadcast_to(trigger[:, None, :], (B, n_e, emb))
    cat = jnp.concatenate([entity, trig, entity * trig], axis=-1)
    mask = (jnp.abs(entity).sum(-1) > 0).astype(jnp.float32)[..., None]
    ta_ref = (cat.reshape(-1, 3 * emb) @ w_ta + b_ta).reshape(B, n_e, emb) * mask

    # ---------------- scoring head self.linear ----------------
    latent = jax.random.normal(keys[4], (B, n_e, n_r, 6 * emb), jnp.float32)
    bnd0 = 1.0 / (6 * emb) ** 0.5
    w0 = jax.random.uniform(keys[5], (6 * emb, n_hid), jnp.float32, -bnd0, bnd0)
    b0 = jax.random.uniform(keys[6], (n_hid,), jnp.float32, -bnd0, bnd0)
    bnd1 = 1.0 / n_hid ** 0.5
    w1 = jax.random.uniform(keys[7], (n_hid, 1), jnp.float32, -bnd1, bnd1)
    b1 = jax.random.uniform(keys[8], (), jnp.float32, -bnd1, bnd1)
    head_prep = prepare_score_head_params(w0, b0, w1, b1)

    score = arg_score_head(head_prep, latent)          # (B, n_e, n_r) == .squeeze(3)

    h_ref = _gelu_tanh(latent.reshape(-1, 6 * emb) @ w0 + b0)
    score_ref = (h_ref @ w1 + b1).reshape(B, n_e, n_r)

    jax.block_until_ready((ta_out, score))

    assert ta_out.shape == (B, n_e, emb)
    assert score.shape == (B, n_e, n_r)
    # bf16 MXU operands -> loosened tolerance vs the f32 reference.
    assert jnp.allclose(ta_out, ta_ref, atol=3e-2, rtol=3e-2), \
        float(jnp.max(jnp.abs(ta_out - ta_ref)))
    assert jnp.allclose(score, score_ref, atol=3e-2, rtol=3e-2), \
        float(jnp.max(jnp.abs(score - score_ref)))

    print("KERNEL_OK")
</pallas_src>

<mosaic_0001>
module attributes {stable_mosaic.version = 11 : i64} {
  func.func @_trigger_aware_kernel(%arg0: i32, %arg1: memref<16x128xf32, #tpu.memory_space<vmem>>, %arg2: memref<16x128xf32, #tpu.memory_space<vmem>>, %arg3: memref<128x128xbf16, #tpu.memory_space<vmem>>, %arg4: memref<128x128xbf16, #tpu.memory_space<vmem>>, %arg5: memref<128x128xbf16, #tpu.memory_space<vmem>>, %arg6: memref<1x128xf32, #tpu.memory_space<vmem>>, %arg7: memref<16x128xf32, #tpu.memory_space<vmem>>) attributes {dimension_semantics = [#tpu.dimension_semantics<parallel>], iteration_bounds = array<i64: 1>, scalar_prefetch = 0 : i64, scratch_operands = 0 : i64, tpu.core_type = #tpu.core_type<tc>, window_params = [{transform_indices = @transform_0, window_bounds = array<i64: 16, 128>}, {transform_indices = @transform_1, window_bounds = array<i64: 16, 128>}, {pipeline_mode = #tpu.pipeline_mode<synchronous>, transform_indices = @transform_2, window_bounds = array<i64: 128, 128>}, {pipeline_mode = #tpu.pipeline_mode<synchronous>, transform_indices = @transform_3, window_bounds = array<i64: 128, 128>}, {pipeline_mode = #tpu.pipeline_mode<synchronous>, transform_indices = @transform_4, window_bounds = array<i64: 128, 128>}, {pipeline_mode = #tpu.pipeline_mode<synchronous>, transform_indices = @transform_5, window_bounds = array<i64: 1, 128>}, {transform_indices = @transform_6, window_bounds = array<i64: 16, 128>}]} {
    %c0 = arith.constant 0 : index
    %c0_0 = arith.constant 0 : index
    %0 = vector.load %arg1[%c0, %c0_0] : memref<16x128xf32, #tpu.memory_space<vmem>>, vector<16x128xf32>
    %c0_1 = arith.constant 0 : index
    %c0_2 = arith.constant 0 : index
    %1 = vector.load %arg2[%c0_1, %c0_2] : memref<16x128xf32, #tpu.memory_space<vmem>>, vector<16x128xf32>
    %2 = arith.truncf %0 : vector<16x128xf32> to vector<16x128xbf16>
    %c0_3 = arith.constant 0 : index
    %c0_4 = arith.constant 0 : index
    %3 = vector.load %arg3[%c0_3, %c0_4] : memref<128x128xbf16, #tpu.memory_space<vmem>>, vector<128x128xbf16>
    %cst = arith.constant dense<0.000000e+00> : vector<16x128xf32>
    %4 = tpu.matmul %2, %3, %cst {dimension_numbers = #tpu.dot_dimension_numbers<[1], [0], [0], [1], [0, 0, 1, 1], [], []>} : vector<16x128xbf16>, vector<128x128xbf16>, vector<16x128xf32> -> vector<16x128xf32>
    %5 = arith.truncf %1 : vector<16x128xf32> to vector<16x128xbf16>
    %c0_5 = arith.constant 0 : index
    %c0_6 = arith.constant 0 : index
    %6 = vector.load %arg4[%c0_5, %c0_6] : memref<128x128xbf16, #tpu.memory_space<vmem>>, vector<128x128xbf16>
    %cst_7 = arith.constant dense<0.000000e+00> : vector<16x128xf32>
    %7 = tpu.matmul %5, %6, %cst_7 {dimension_numbers = #tpu.dot_dimension_numbers<[1], [0], [0], [1], [0, 0, 1, 1], [], []>} : vector<16x128xbf16>, vector<128x128xbf16>, vector<16x128xf32> -> vector<16x128xf32>
    %8 = arith.addf %4, %7 : vector<16x128xf32>
    %9 = arith.mulf %0, %1 : vector<16x128xf32>
    %10 = arith.truncf %9 : vector<16x128xf32> to vector<16x128xbf16>
    %c0_8 = arith.constant 0 : index
    %c0_9 = arith.constant 0 : index
    %11 = vector.load %arg5[%c0_8, %c0_9] : memref<128x128xbf16, #tpu.memory_space<vmem>>, vector<128x128xbf16>
    %cst_10 = arith.constant dense<0.000000e+00> : vector<16x128xf32>
    %12 = tpu.matmul %10, %11, %cst_10 {dimension_numbers = #tpu.dot_dimension_numbers<[1], [0], [0], [1], [0, 0, 1, 1], [], []>} : vector<16x128xbf16>, vector<128x128xbf16>, vector<16x128xf32> -> vector<16x128xf32>
    %13 = arith.addf %8, %12 : vector<16x128xf32>
    %c0_11 = arith.constant 0 : index
    %c0_12 = arith.constant 0 : index
    %14 = vector.load %arg6[%c0_11, %c0_12] : memref<1x128xf32, #tpu.memory_space<vmem>>, vector<1x128xf32>
    %15 = vector.broadcast %14 : vector<1x128xf32> to vector<16x128xf32>
    %16 = arith.addf %13, %15 : vector<16x128xf32>
    %17 = math.absf %0 : vector<16x128xf32>
    %cst_13 = arith.constant dense<0.000000e+00> : vector<16xf32>
    %18 = vector.multi_reduction <add>, %17, %cst_13 [1] : vector<16x128xf32> to vector<16xf32>
    %19 = vector.shape_cast %18 : vector<16xf32> to vector<16x1xf32>
    %cst_14 = arith.constant 0.000000e+00 : f32
    %20 = vector.broadcast %cst_14 : f32 to vector<16x1xf32>
    %21 = arith.cmpf ogt, %19, %20 : vector<16x1xf32>
    %cst_15 = arith.constant 0.000000e+00 : f32
    %22 = vector.shape_cast %21 : vector<16x1xi1> to vector<16x1xi1>
    %23 = vector.broadcast %22 : vector<16x1xi1> to vector<16x128xi1>
    %24 = vector.broadcast %cst_15 : f32 to vector<16x128xf32>
    %25 = arith.select %23, %16, %24 : vector<16x128xi1>, vector<16x128xf32>
    %c0_16 = arith.constant 0 : index
    %c0_17 = arith.constant 0 : index
    %26 = vector.load %arg7[%c0_16, %c0_17] : memref<16x128xf32, #tpu.memory_space<vmem>>, vector<16x128xf32>
    tpu.vector_store %arg7[%c0_16, %c0_17], %25 {strides = array<i32>} : memref<16x128xf32, #tpu.memory_space<vmem>>, vector<16x128xf32>,
    return
  }
  func.func @transform_0(%arg0: i32) -> (i32, i32) {
    %c0_i32 = arith.constant 0 : i32
    %c0_i32_0 = arith.constant 0 : i32
    return %arg0, %c0_i32 : i32, i32
  }
  func.func @transform_1(%arg0: i32) -> (i32, i32) {
    %c0_i32 = arith.constant 0 : i32
    %c0_i32_0 = arith.constant 0 : i32
    return %arg0, %c0_i32 : i32, i32
  }
  func.func @transform_2(%arg0: i32) -> (i32, i32) {
    %c0_i32 = arith.constant 0 : i32
    %c0_i32_0 = arith.constant 0 : i32
    %c0_i32_1 = arith.constant 0 : i32
    return %c0_i32, %c0_i32_0 : i32, i32
  }
  func.func @transform_3(%arg0: i32) -> (i32, i32) {
    %c0_i32 = arith.constant 0 : i32
    %c0_i32_0 = arith.constant 0 : i32
    %c0_i32_1 = arith.constant 0 : i32
    return %c0_i32, %c0_i32_0 : i32, i32
  }
  func.func @transform_4(%arg0: i32) -> (i32, i32) {
    %c0_i32 = arith.constant 0 : i32
    %c0_i32_0 = arith.constant 0 : i32
    %c0_i32_1 = arith.constant 0 : i32
    return %c0_i32, %c0_i32_0 : i32, i32
  }
  func.func @transform_5(%arg0: i32) -> (i32, i32) {
    %c0_i32 = arith.constant 0 : i32
    %c0_i32_0 = arith.constant 0 : i32
    %c0_i32_1 = arith.constant 0 : i32
    return %c0_i32, %c0_i32_0 : i32, i32
  }
  func.func @transform_6(%arg0: i32) -> (i32, i32) {
    %c0_i32 = arith.constant 0 : i32
    %c0_i32_0 = arith.constant 0 : i32
    return %arg0, %c0_i32 : i32, i32
  }
}

</mosaic_0001>

<bundles_post_ra>
// kernel: tpu_custom_call.1
= control target key start
LH: loop header
LB: loop body
LE: loop exit
PB: predicated region body
PF: predicated region fallthrough
CT: control target
= control target key end

     0   :  { %11 = vsyncpa [#allocation3], 0  ;;  %s921_s0 = inlined_call_operand.hbm [shape: f32[16,128], index: 0, kind: input, shape index: {}]   ;;  %s922_s1 = inlined_call_operand.hbm [shape: f32[16,128], index: 1, kind: input, shape index: {}]   ;;  %s923_s2 = inlined_call_operand.hbm [shape: bf16[128,128], index: 2, kind: input, shape index: {}]   ;;  %s924_s3 = inlined_call_operand.hbm [shape: bf16[128,128], index: 3, kind: input, shape index: {}]   ;;  %s925_s4 = inlined_call_operand.hbm [shape: bf16[128,128], index: 4, kind: input, shape index: {}]   ;;  %s926_s5 = inlined_call_operand.vmem [shape: f32[1,128], index: 5, kind: input, shape index: {}]   ;;  %s927_s6 = inlined_call_operand.hbm [shape: f32[16,128], index: 6, kind: output, shape index: {}]  }
   0x1   :  { %12 = vsyncpa [#allocation6], 0 }
   0x2   :  { %13 = vsyncpa [#allocation9], 0 }
   0x3   :  { %14 = vsyncpa [#allocation4], 0  ;;  %s751_s21 = smov [#allocation5]   ;;  %s611_s25 = scalar_lea.hbm %s922_s1, 256 }
   0x4   :  { %s32_s22 = sshll.u32 %s751_s21, 4  ;;  %p612_p0 = scmp.ne.s32.totalorder %s922_s1, %s611_s25  ;;  %s33_s22 = int_to_ptr.vmem [resolvable:$true] %s32_s22 }
   0x5   :  { %p615_p1 = scmp.lt.u32.totalorder %s611_s25, %s922_s1 }
   0x7   :  { %p617_p2 = pnand %p615_p1, %p612_p0 }
   0x9   :  { %620 = shalt.err (!%p617_p2)
}
   0xa   :  { %s621_s30 = scalar_lea.vmem %s33_s22, 256  ;;  %p626_p4 = scmp.lt.s32.totalorder %s33_s22, %s33_s22 }
   0xb   :  { %p622_p3 = scmp.ne.s32.totalorder %s33_s22, %s621_s30  ;;  %p627_p5 = scmp.lt.s32.totalorder %s621_s30, %s621_s30 }
   0xd   :  { %p628_p6 = por %p627_p5, %p626_p4 }
   0xf   :  { %p629_p7 = pnand %p628_p6, %p622_p3 }
  0x11   :  { %632 = shalt.err (!%p629_p7)
}
  0x12   :  { %s752_s7 = smov 128   ;;  %s753_s8 = smov 8  }
  0x13   :  { %38 = dma.hbm_to_vmem [thread:$0]  %s922_s1, 256, %s33_s22, [#allocation6], %s752_s7, %s752_s7, %s753_s8  }
  0x14   :  { %s754_s11 = smov [#allocation8]   ;;  %s755_s13 = smov [#allocation2]  }
  0x15   :  { %s56_s12 = sshll.u32 %s754_s11, 4  ;;  %s20_s14 = sshll.u32 %s755_s13, 4  ;;  %s57_s12 = int_to_ptr.vmem [resolvable:$true] %s56_s12  ;;  %s21_s14 = int_to_ptr.vmem [resolvable:$true] %s20_s14 }
  0x16   :  { %s633_s17 = scalar_lea.hbm %s924_s3, 1024 }
  0x17   :  { %p634_p8 = scmp.ne.s32.totalorder %s924_s3, %s633_s17  ;;  %p637_p9 = scmp.lt.u32.totalorder %s633_s17, %s924_s3 }
  0x19   :  { %p639_p10 = pnand %p637_p9, %p634_p8 }
  0x1b   :  { %642 = shalt.err (!%p639_p10)
}
  0x1c   :  { %s643_s1 = scalar_lea.vmem %s57_s12, 1024  ;;  %p648_p12 = scmp.lt.s32.totalorder %s57_s12, %s57_s12 }
  0x1d   :  { %p644_p11 = scmp.ne.s32.totalorder %s57_s12, %s643_s1  ;;  %p649_p13 = scmp.lt.s32.totalorder %s643_s1, %s643_s1 }
  0x1f   :  { %p650_p0 = por %p649_p13, %p648_p12 }
  0x21   :  { %p651_p1 = pnand %p650_p0, %p644_p11 }
  0x23   :  { %654 = shalt.err (!%p651_p1)
}
  0x24   :  { %s756_s22 = smov 64   ;;  %s757_s23 = smov 4  }
  0x25   :  { %62 = dma.hbm_to_vmem [thread:$0]  %s924_s3, 1024, %s57_s12, [#allocation9], %s756_s22, %s756_s22, %s757_s23  }
  0x26   :  { %s655_s28 = scalar_lea.hbm %s921_s0, 256 }
  0x27   :  { %p656_p2 = scmp.ne.s32.totalorder %s921_s0, %s655_s28  ;;  %p659_p3 = scmp.lt.u32.totalorder %s655_s28, %s921_s0 }
  0x29   :  { %p661_p4 = pnand %p659_p3, %p656_p2 }
  0x2b   :  { %664 = shalt.err (!%p661_p4)
}
  0x2c   :  { %s665_s11 = scalar_lea.vmem %s21_s14, 256  ;;  %p670_p6 = scmp.lt.s32.totalorder %s21_s14, %s21_s14 }
  0x2d   :  { %p666_p5 = scmp.ne.s32.totalorder %s21_s14, %s665_s11  ;;  %p671_p7 = scmp.lt.s32.totalorder %s665_s11, %s665_s11 }
  0x2f   :  { %p672_p8 = por %p671_p7, %p670_p6 }
  0x31   :  { %p673_p9 = pnand %p672_p8, %p666_p5 }
  0x33   :  { %676 = shalt.err (!%p673_p9)
}
  0x34   :  { %26 = dma.hbm_to_vmem [thread:$0]  %s921_s0, 256, %s21_s14, [#allocation3], %s752_s7, %s752_s7, %s753_s8  }
  0x35   :  { %s758_s13 = smov [#allocation7]   ;;  %s759_s16 = smov [#allocation10]  }
  0x36   :  { %s44_s15 = sshll.u32 %s758_s13, 4  ;;  %s68_s17 = sshll.u32 %s759_s16, 4  ;;  %s45_s15 = int_to_ptr.vmem [resolvable:$true] %s44_s15  ;;  %s69_s17 = int_to_ptr.vmem [resolvable:$true] %s68_s17 }
  0x37   :  { %s677_s20 = scalar_lea.hbm %s923_s2, 1024 }
  0x38   :  { %p678_p10 = scmp.ne.s32.totalorder %s923_s2, %s677_s20  ;;  %p681_p11 = scmp.lt.u32.totalorder %s677_s20, %s923_s2 }
  0x3a   :  { %p683_p12 = pnand %p681_p11, %p678_p10 }
  0x3c   :  { %686 = shalt.err (!%p683_p12)
}
  0x3d   :  { %s687_s0 = scalar_lea.vmem %s45_s15, 1024  ;;  %p692_p0 = scmp.lt.s32.totalorder %s45_s15, %s45_s15 }
  0x3e   :  { %p688_p13 = scmp.ne.s32.totalorder %s45_s15, %s687_s0  ;;  %p693_p1 = scmp.lt.s32.totalorder %s687_s0, %s687_s0 }
  0x40   :  { %p694_p2 = por %p693_p1, %p692_p0 }
  0x42   :  { %p695_p3 = pnand %p694_p2, %p688_p13 }
  0x44   :  { %698 = shalt.err (!%p695_p3)
}
  0x45   :  { %50 = dma.hbm_to_vmem [thread:$0]  %s923_s2, 1024, %s45_s15, [#allocation6], %s756_s22, %s756_s22, %s757_s23  }
  0x46   :  { %s699_s29 = scalar_lea.hbm %s925_s4, 1024 }
  0x47   :  { %p700_p4 = scmp.ne.s32.totalorder %s925_s4, %s699_s29  ;;  %p703_p5 = scmp.lt.u32.totalorder %s699_s29, %s925_s4 }
  0x49   :  { %p705_p6 = pnand %p703_p5, %p700_p4 }
  0x4b   :  { %708 = shalt.err (!%p705_p6)
}
  0x4c   :  { %s709_s3 = scalar_lea.vmem %s69_s17, 1024  ;;  %p714_p8 = scmp.lt.s32.totalorder %s69_s17, %s69_s17 }
  0x4d   :  { %p710_p7 = scmp.ne.s32.totalorder %s69_s17, %s709_s3  ;;  %p715_p9 = scmp.lt.s32.totalorder %s709_s3, %s709_s3 }
  0x4f   :  { %p716_p10 = por %p715_p9, %p714_p8 }
  0x51   :  { %p717_p11 = pnand %p716_p10, %p710_p7 }
  0x53   :  { %720 = shalt.err (!%p717_p11)
}
  0x54   :  { %74 = dma.hbm_to_vmem [thread:$0]  %s925_s4, 1024, %s69_s17, [#allocation9], %s756_s22, %s756_s22, %s757_s23  }
  0x55   :  { %743 = dma.done.wait [#allocation3], 256  }
  0x56   :  { %744 = vsyncadd [#allocation3], 4294967040 }
  0x57   :  { %745 = dma.done.wait [#allocation6], 1280  }
  0x58   :  { %746 = vsyncadd [#allocation6], 4294966016 }
  0x59   :  { %747 = dma.done.wait [#allocation9], 2048  }
  0x5a   :  { %748 = vsyncadd [#allocation9], 4294965248  ;;  %v760_v0 = vmov 0.0   ;;  %vm761_vm0 = vmmov 0   ;;  %v587_v1 = vld [vmem:[#allocation8] sm:$0xff]   ;;  %v589_v3 = vld [vmem:[#allocation8 + $0x8] sm:$0xff]  }
  0x5b   :  { %515 = vmatprep.subr.bf16.mxu0 %v760_v0  ;;  %535 = vmatprep.subr.bf16.mxu1 %v760_v0  ;;  %v588_v2 = vld [vmem:[#allocation7] sm:$0xff]   ;;  %v590_v4 = vld [vmem:[#allocation7 + $0x8] sm:$0xff]   ;;  %v591_v5 = vld [vmem:[#allocation8 + $0x10] sm:$0xff]   ;;  %s762_s23 = smov [#allocation11]  }
  0x5c   :  { %531 = vmatprep.mubr.msk.bf16.mxu0 %vm761_vm0, %v760_v0  ;;  %551 = vmatprep.mubr.msk.bf16.mxu1 %vm761_vm0, %v760_v0  ;;  %v592_v6 = vld [vmem:[#allocation7 + $0x10] sm:$0xff]   ;;  %v593_v7 = vld [vmem:[#allocation8 + $0x18] sm:$0xff]   ;;  %v595_v9 = vld [vmem:[#allocation8 + $0x20] sm:$0xff]   ;;  %s449_s13 = sshll.u32 %s762_s23, 4  ;;  %s450_s13 = int_to_ptr.vmem [resolvable:$true] %s449_s13 }
  0x5d   :  { %516 = vmatpush3.bf16.msra.mxu0 %v587_v1  ;;  %536 = vmatpush3.bf16.msra.mxu1 %v588_v2  ;;  %v594_v8 = vld [vmem:[#allocation7 + $0x18] sm:$0xff]   ;;  %v596_v10 = vld [vmem:[#allocation7 + $0x20] sm:$0xff]   ;;  %v597_v11 = vld [vmem:[#allocation8 + $0x28] sm:$0xff]   ;;  %s721_s15 = scalar_lea.vmem %s450_s13, 256  ;;  %p726_p13 = scmp.lt.s32.totalorder %s450_s13, %s450_s13 }
  0x5e   :  { %517 = vmatprep.subr.bf16.mxu0 %v760_v0  ;;  %537 = vmatprep.subr.bf16.mxu1 %v760_v0  ;;  %v598_v12 = vld [vmem:[#allocation7 + $0x28] sm:$0xff]   ;;  %v599_v13 = vld [vmem:[#allocation8 + $0x30] sm:$0xff]   ;;  %v93_v15 = vld [vmem:[#allocation2] sm:$0xff]  ;;  %p722_p12 = scmp.ne.s32.totalorder %s450_s13, %s721_s15  ;;  %p727_p0 = scmp.lt.s32.totalorder %s721_s15, %s721_s15 }
  0x5f   :  { %v600_v14 = vld [vmem:[#allocation7 + $0x30] sm:$0xff]   ;;  %v428_v16 = vand.u32 2147483647, %v93_v15  ;;  %v601_v17 = vld [vmem:[#allocation8 + $0x38] sm:$0xff]   ;;  %v94_v21 = vld [vmem:[#allocation2 + $0x8] sm:$0xff] }
  0x60   :  { %v95_v18 = vld [vmem:[#allocation5] sm:$0xff]  ;;  %v96_v19 = vld [vmem:[#allocation5 + $0x8] sm:$0xff]  ;;  %v429_v22 = vand.u32 2147483647, %v94_v21  ;;  %v97_v24 = vpack.c.bf16 %v94_v21, %v93_v15  ;;  %v603_v25 = vld [vmem:[#allocation10] sm:$0xff]   ;;  %p728_p1 = por %p727_p0, %p726_p13 }
  0x61   :  { %518 = vmatpush3.bf16.msra.mxu0 %v589_v3  ;;  %538 = vmatpush3.bf16.msra.mxu1 %v590_v4  ;;  %v602_v20 = vld [vmem:[#allocation7 + $0x38] sm:$0xff]   ;;  %v114_v23 = vpack.c.bf16 %v96_v19, %v95_v18  ;;  %v604_v26 = vld [vmem:[#allocation10 + $0x8] sm:$0xff]   ;;  %v605_v27 = vld [vmem:[#allocation10 + $0x10] sm:$0xff]   ;;  %v309_v32 = vmul.f32 %v95_v18, %v93_v15  ;;  %v310_v33 = vmul.f32 %v96_v19, %v94_v21 }
  0x62   :  { %519 = vmatprep.subr.bf16.mxu0 %v760_v0  ;;  %539 = vmatprep.subr.bf16.mxu1 %v760_v0  ;;  %v606_v28 = vld [vmem:[#allocation10 + $0x18] sm:$0xff]   ;;  %v607_v29 = vld [vmem:[#allocation10 + $0x20] sm:$0xff]   ;;  %v608_v30 = vld [vmem:[#allocation10 + $0x28] sm:$0xff]   ;;  %p729_p2 = pnand %p728_p1, %p722_p12 }
  0x63   :  { %430 = vadd.xlane.f32.xlu0 %v428_v16  ;;  %v609_v31 = vld [vmem:[#allocation10 + $0x30] sm:$0xff]   ;;  %v610_v34 = vld [vmem:[#allocation10 + $0x38] sm:$0xff]   ;;  %v311_v35 = vpack.c.bf16 %v310_v33, %v309_v32  ;;  %v487_v48 = vld [vmem:[%s926_s5] ss:$0 sm:$0xff] }
  0x65   :  { %520 = vmatpush3.bf16.msra.mxu0 %v591_v5  ;;  %540 = vmatpush3.bf16.msra.mxu1 %v592_v6 }
  0x66   :  { %521 = vmatprep.subr.bf16.mxu0 %v760_v0  ;;  %541 = vmatprep.subr.bf16.mxu1 %v760_v0 }
  0x67   :  { %432 = vadd.xlane.f32.xlu0 %v429_v22 }
  0x69   :  { %522 = vmatpush3.bf16.msra.mxu0 %v593_v7  ;;  %542 = vmatpush3.bf16.msra.mxu1 %v594_v8 }
  0x6a   :  { %523 = vmatprep.subr.bf16.mxu0 %v760_v0  ;;  %543 = vmatprep.subr.bf16.mxu1 %v760_v0 }
  0x6d   :  { %524 = vmatpush3.bf16.msra.mxu0 %v595_v9  ;;  %544 = vmatpush3.bf16.msra.mxu1 %v596_v10 }
  0x6e   :  { %525 = vmatprep.subr.bf16.mxu0 %v760_v0  ;;  %545 = vmatprep.subr.bf16.mxu1 %v760_v0 }
  0x71   :  { %526 = vmatpush3.bf16.msra.mxu0 %v597_v11  ;;  %546 = vmatpush3.bf16.msra.mxu1 %v598_v12 }
  0x72   :  { %527 = vmatprep.subr.bf16.mxu0 %v760_v0  ;;  %547 = vmatprep.subr.bf16.mxu1 %v760_v0 }
  0x75   :  { %528 = vmatpush3.bf16.msra.mxu0 %v599_v13  ;;  %548 = vmatpush3.bf16.msra.mxu1 %v600_v14 }
  0x76   :  { %529 = vmatprep.subr.bf16.mxu0 %v760_v0  ;;  %549 = vmatprep.subr.bf16.mxu1 %v760_v0 }
  0x79   :  { %530 = vmatpush3.bf16.msra.mxu0 %v601_v17  ;;  %550 = vmatpush3.bf16.msra.mxu1 %v602_v20 }
  0x7a   :  { %555 = vmatprep.subr.bf16.mxu0 %v760_v0 }
  0x7c   :  { %532 = vmatmul.mubr.bf16.vlgmr.msra.gmra.mrb[0].mxu0 %v114_v23  ;;  %552 = vmatmul.mubr.bf16.vlgmr.msra.gmra.mrb[0].mxu1 %v97_v24 }
  0x7d   :  { %556 = vmatpush3.bf16.msra.mxu0 %v603_v25  ;;  %571 = vmatprep.mubr.msk.bf16.mxu0 %vm761_vm0, %v760_v0 }
  0x7e   :  { %557 = vmatprep.subr.bf16.mxu0 %v760_v0 }
  0x81   :  { %558 = vmatpush3.bf16.msra.mxu0 %v604_v26 }
  0x82   :  { %559 = vmatprep.subr.bf16.mxu0 %v760_v0 }
  0x85   :  { %560 = vmatpush3.bf16.msra.mxu0 %v605_v27 }
  0x86   :  { %561 = vmatprep.subr.bf16.mxu0 %v760_v0 }
  0x89   :  { %562 = vmatpush3.bf16.msra.mxu0 %v606_v28 }
  0x8a   :  { %563 = vmatprep.subr.bf16.mxu0 %v760_v0 }
  0x8d   :  { %564 = vmatpush3.bf16.msra.mxu0 %v607_v29 }
  0x8e   :  { %565 = vmatprep.subr.bf16.mxu0 %v760_v0 }
  0x91   :  { %566 = vmatpush3.bf16.msra.mxu0 %v608_v30 }
  0x92   :  { %567 = vmatprep.subr.bf16.mxu0 %v760_v0 }
  0x95   :  { %568 = vmatpush3.bf16.msra.mxu0 %v609_v31 }
  0x96   :  { %569 = vmatprep.subr.bf16.mxu0 %v760_v0 }
  0x99   :  { %570 = vmatpush3.bf16.msra.mxu0 %v610_v34 }
  0x9c   :  { %572 = vmatmul.mubr.bf16.vlgmr.msra.gmra.mrb[4].mxu0 %v311_v35 }
  0xf0   :  { %v431_v46 = vpop.xlane.xlu0 %430 }
  0xf1   :  { %vm434_vm1 = vcmp.gt.f32.partialorder %v431_v46, 0.0 }
  0xf4   :  { %v433_v51 = vpop.xlane.xlu0 %432 }
  0xf5   :  { %vm435_vm2 = vcmp.gt.f32.partialorder %v433_v51, 0.0 }
 0x14f   :  { %v213_v36 = vpop.f32.mrb[0].mxu0  ;;  %v302_v37 = vpop.f32.mrb[0].mxu1 }
 0x150   :  { %v533_v38 = vpop.f32.mrb[1].mxu0  ;;  %v303_v39 = vadd.f32 %v302_v37, %v213_v36  ;;  %v553_v40 = vpop.f32.mrb[1].mxu1 }
 0x151   :  { %v216_v41 = vpop.f32.mrb[2].mxu0  ;;  %v305_v42 = vpop.f32.mrb[2].mxu1 }
 0x152   :  { %v534_v43 = vpop.f32.mrb[3].mxu0  ;;  %v306_v44 = vadd.f32 %v305_v42, %v216_v41  ;;  %v554_v45 = vpop.f32.mrb[3].mxu1 }
 0x16f   :  { %v410_v47 = vpop.f32.mrb[4].mxu0 }
 0x170   :  { %v417_v49 = vadd.f32 %v410_v47, %v303_v39  ;;  %v573_v50 = vpop.f32.mrb[5].mxu0 }
 0x171   :  { %v413_v52 = vpop.f32.mrb[6].mxu0 }
 0x172   :  { %v426_v53 = vadd.f32 %v487_v48, %v417_v49  ;;  %v418_v54 = vadd.f32 %v413_v52, %v306_v44  ;;  %v574_v55 = vpop.f32.mrb[7].mxu0 }
 0x174   :  { %v440_v56 = vsel %vm434_vm1, %v426_v53, 0.0  ;;  %v427_v57 = vadd.f32 %v487_v48, %v418_v54 }
 0x175   :  { %442 = vst [vmem:[#allocation11] sm:$0xff] %v440_v56 }
 0x176   :  { %v441_v58 = vsel %vm435_vm2, %v427_v57, 0.0 }
 0x177   :  { %443 = vst [vmem:[#allocation11 + $0x8] sm:$0xff] %v441_v58 }
 0x178   :  { %732 = shalt.err (!%p729_p2)
}
 0x179   :  { %s733_s17 = scalar_lea.hbm %s927_s6, 256 }
 0x17a   :  { %p734_p3 = scmp.ne.s32.totalorder %s927_s6, %s733_s17  ;;  %p737_p4 = scmp.lt.u32.totalorder %s733_s17, %s927_s6 }
 0x17c   :  { %p739_p5 = pnand %p737_p4, %p734_p3 }
 0x17e   :  { %742 = shalt.err (!%p739_p5)
}
 0x17f   :  { %455 = dma.vmem_to_hbm [thread:$0]  %s450_s13, 256, %s927_s6, [#allocation4], %s752_s7, %s752_s7, %s753_s8  }
 0x180   :  { %749 = dma.done.wait [#allocation4], 256  }
 0x181   :  { %750 = vsyncadd [#allocation4], 4294967040 }
 0x182   :  { %459 = vsyncpa [#allocation3], 1 }
 0x183   :  { %460 = vsyncpa [#allocation6], 1 }
 0x184   :  { %461 = vsyncpa [#allocation9], 1 }
 0x185   :  { %462 = vsyncpa [#allocation4], 1 }

</bundles_post_ra>
